<compile_context>
chip_gen: v7x
topology: tpu7x:2x2x1
jax: 0.10.0
libtpu: 0.0.40
codegen_flags: <defaults>
</compile_context>

<pallas_src>
import math

import jax
import jax.numpy as jnp
from jax.experimental import pallas as pl
from jax.experimental.pallas import tpu as pltpu


def _round_up(x: int, m: int) -> int:
    return ((x + m - 1) // m) * m


# --------------------------------------------------------------------------
# Kernels
# --------------------------------------------------------------------------

def _folded_kernel(x_ref, w_ref, b_ref, o_ref):
    # x_ref : (1, T_tile, K*C_in)   tap-folded input tile
    # w_ref : (K*C_in, C_out_p)     tap-folded weights (resident)
    # b_ref : (1, C_out_p)          f32 bias (resident)
    # o_ref : (1, T_tile, C_out_p)  lane-dense output tile
    y = jnp.dot(x_ref[0], w_ref[...], preferred_element_type=jnp.float32)
    o_ref[0] = (y + b_ref[...]).astype(o_ref.dtype)


def _make_tap_kernel(K: int, dilation: int, t_tile: int, d_pad: int):
    def tap_kernel(x_ref, xh_ref, w_ref, b_ref, o_ref, xwin_ref, acc_ref):
        # x_ref   : (1, T_tile, C_in)    current time tile
        # xh_ref  : (1, d_pad, C_in)     halo rows just after the tile
        # w_ref   : (K, C_in, C_out_p)   weights (resident)
        # b_ref   : (1, C_out_p)         f32 bias (resident)
        # o_ref   : (1, T_tile, C_out_p) output tile
        # xwin_ref: VMEM (T_tile + d_pad, C_in) scratch  -- tile + halo window
        # acc_ref : VMEM (T_tile, C_out_p) f32 scratch   -- bounded accumulator
        xwin_ref[pl.ds(0, t_tile), :] = x_ref[0]
        xwin_ref[pl.ds(t_tile, d_pad), :] = xh_ref[0]

        # k = 0 initializes the accumulator directly (no zero-fill + add).
        acc_ref[...] = jnp.dot(xwin_ref[pl.ds(0, t_tile), :], w_ref[0],
                               preferred_element_type=jnp.float32)
        for k in range(1, K):  # K is small & static -> unrolled
            acc_ref[...] += jnp.dot(xwin_ref[pl.ds(k * dilation, t_tile), :],
                                    w_ref[k],
                                    preferred_element_type=jnp.float32)

        o_ref[0] = (acc_ref[...] + b_ref[...]).astype(o_ref.dtype)

    return tap_kernel


# --------------------------------------------------------------------------
# Forward wrapper (matches torch ConvNorm.forward semantics, stride=1)
# --------------------------------------------------------------------------

def conv_norm_forward(signal, weight, bias, *, stride=1, padding=None, dilation=1,
                      compute_dtype=None, channels_last=False, t_tile_target=256):
    """ConvNorm.forward.

    signal : (B, C_in, T) NCW (default)  or (B, T, C_in) if channels_last=True
    weight : (C_out, C_in, K)  torch Conv1d weight layout
    bias   : (C_out,)
    returns (B, C_out, T_out)  (or (B, T_out, C_out) if channels_last=True)
    """
    assert stride == 1, "kernel implements the default stride=1 path"
    C_out, C_in, K = weight.shape

    if channels_last:
        B, T, C_in_x = signal.shape
        x_nwc = signal
    else:
        B, C_in_x, T = signal.shape
        x_nwc = jnp.transpose(signal, (0, 2, 1))          # (B, T, C_in)
    assert C_in_x == C_in

    if padding is None:
        assert K % 2 == 1
        padding = int(dilation * (K - 1) / 2)

    D = dilation * (K - 1)                                # receptive-field halo
    T_out = T + 2 * padding - D
    assert T_out > 0

    out_dtype = signal.dtype
    cdt = compute_dtype if compute_dtype is not None else signal.dtype

    # Lane-dense output: pad C_out up to a multiple of 128 (sliced off below).
    C_out_p = _round_up(C_out, 128)

    w_kio = jnp.transpose(weight, (2, 1, 0))              # (K, C_in, C_out)
    w_kio = jnp.pad(w_kio, ((0, 0), (0, 0), (0, C_out_p - C_out))).astype(cdt)
    b_2d = jnp.pad(bias, (0, C_out_p - C_out)).reshape(1, C_out_p).astype(jnp.float32)

    compiler_params = pltpu.CompilerParams(
        dimension_semantics=("parallel", "parallel"),
        vmem_limit_bytes=32 * 1024 * 1024,   # explicit budget: safe on v5e/v6e/v7x
    )

    fold_taps = (K * C_in) <= 128   # small-C_in path: fold taps into contraction

    if fold_taps:
        # ---------------- folded (im2col over taps) path --------------------
        t_tile = _round_up(min(t_tile_target, _round_up(T_out, 8)), 8)
        num_t = (T_out + t_tile - 1) // t_tile
        T_out_p = num_t * t_tile
        N_x = T_out_p + D
        back_pad = N_x - T - padding
        x_tp = jnp.pad(x_nwc, ((0, 0), (padding, back_pad), (0, 0))).astype(cdt)

        KC = K * C_in
        # Tap-folded LHS: x_fold[b, t, k*C_in + c] = x_tp[b, t + k*dilation, c]
        x_fold = jnp.concatenate(
            [jax.lax.slice_in_dim(x_tp, k * dilation, k * dilation + T_out_p, axis=1)
             for k in range(K)],
            axis=-1)                                      # (B, T_out_p, KC)
        w_fold = w_kio.reshape(KC, C_out_p)               # (KC, C_out_p)

        out_p = pl.pallas_call(
            _folded_kernel,
            out_shape=jax.ShapeDtypeStruct((B, T_out_p, C_out_p), out_dtype),
            grid_spec=pltpu.PrefetchScalarGridSpec(
                num_scalar_prefetch=0,
                grid=(B, num_t),
                in_specs=[
                    pl.BlockSpec((1, t_tile, KC), lambda b, t: (b, t, 0)),
                    pl.BlockSpec((KC, C_out_p), lambda b, t: (0, 0)),   # resident
                    pl.BlockSpec((1, C_out_p), lambda b, t: (0, 0)),    # resident
                ],
                out_specs=pl.BlockSpec((1, t_tile, C_out_p), lambda b, t: (b, t, 0)),
            ),
            compiler_params=compiler_params,
        )(x_fold, w_fold, b_2d)
    else:
        # ---------------- per-tap path (large C_in) --------------------------
        d_pad = _round_up(max(D, 8), 8)                   # halo rows, sublane-aligned
        t_tile = _round_up(min(t_tile_target, _round_up(T_out, 8)), d_pad)
        num_t = (T_out + t_tile - 1) // t_tile
        T_out_p = num_t * t_tile
        N_x = T_out_p + d_pad
        back_pad = N_x - T - padding
        x_tp = jnp.pad(x_nwc, ((0, 0), (padding, back_pad), (0, 0))).astype(cdt)

        halo_ratio = t_tile // d_pad                      # d_pad divides t_tile
        kernel = _make_tap_kernel(K, dilation, t_tile, d_pad)

        out_p = pl.pallas_call(
            kernel,
            out_shape=jax.ShapeDtypeStruct((B, T_out_p, C_out_p), out_dtype),
            grid_spec=pltpu.PrefetchScalarGridSpec(
                num_scalar_prefetch=0,
                grid=(B, num_t),
                in_specs=[
                    # main time tile of x
                    pl.BlockSpec((1, t_tile, C_in), lambda b, t: (b, t, 0)),
                    # small halo view right after the tile (same array, 2nd view)
                    pl.BlockSpec((1, d_pad, C_in),
                                 lambda b, t: (b, (t + 1) * halo_ratio, 0)),
                    pl.BlockSpec((K, C_in, C_out_p), lambda b, t: (0, 0, 0)),  # resident
                    pl.BlockSpec((1, C_out_p), lambda b, t: (0, 0)),           # resident
                ],
                out_specs=pl.BlockSpec((1, t_tile, C_out_p), lambda b, t: (b, t, 0)),
                scratch_shapes=[
                    pltpu.VMEM((t_tile + d_pad, C_in), cdt),      # window scratch
                    pltpu.VMEM((t_tile, C_out_p), jnp.float32),   # f32 accumulator
                ],
            ),
            compiler_params=compiler_params,
        )(x_tp, x_tp, w_kio, b_2d)

    out_nwc = out_p[:, :T_out, :C_out]                    # drop T/C padding
    if channels_last:
        return out_nwc
    return jnp.transpose(out_nwc, (0, 2, 1))              # (B, C_out, T_out)


# --------------------------------------------------------------------------
# Init (matches torch xavier_uniform_ + default Conv1d bias init)
# --------------------------------------------------------------------------

def init_conv_norm_params(key, in_channels, out_channels, kernel_size,
                          w_init_gain="linear", dtype=jnp.float32):
    gain = {"linear": 1.0, "relu": math.sqrt(2.0),
            "tanh": 5.0 / 3.0, "sigmoid": 1.0}[w_init_gain]
    fan_in = in_channels * kernel_size
    fan_out = out_channels * kernel_size
    bound = gain * math.sqrt(6.0 / (fan_in + fan_out))
    wkey, bkey = jax.random.split(key)
    weight = jax.random.uniform(
        wkey, (out_channels, in_channels, kernel_size),
        minval=-bound, maxval=bound, dtype=dtype)
    b_bound = 1.0 / math.sqrt(fan_in)
    bias = jax.random.uniform(
        bkey, (out_channels,), minval=-b_bound, maxval=b_bound, dtype=dtype)
    return weight, bias


def _reference_conv1d(signal, weight, bias, padding, dilation):
    out = jax.lax.conv_general_dilated(
        signal, weight,
        window_strides=(1,),
        padding=[(padding, padding)],
        rhs_dilation=(dilation,),
        dimension_numbers=("NCH", "OIH", "NCH"),
    )
    return out + bias[None, :, None]


if __name__ == "__main__":
    root = jax.random.PRNGKey(0)

    def run_case(key, B, C_in, C_out, K, T, dilation, compute_dtype=None,
                 atol=1e-5, rtol=1e-5):
        pkey, xkey = jax.random.split(key)
        weight, bias = init_conv_norm_params(pkey, C_in, C_out, K)
        x = jax.random.normal(xkey, (B, C_in, T), dtype=jnp.float32)
        out = conv_norm_forward(x, weight, bias, stride=1, padding=None,
                                dilation=dilation, compute_dtype=compute_dtype)
        out = jax.block_until_ready(out)

        padding = int(dilation * (K - 1) / 2)
        ref = _reference_conv1d(x, weight, bias, padding, dilation)
        T_out = T + 2 * padding - dilation * (K - 1)
        assert out.shape == ref.shape == (B, C_out, T_out), (out.shape, ref.shape)
        err = float(jnp.max(jnp.abs(out.astype(jnp.float32) - ref)))
        assert jnp.allclose(out.astype(jnp.float32), ref, atol=atol, rtol=rtol), err

    k1, k2, k3 = jax.random.split(root, 3)

    # 1) small, spec-consistent shapes -> tap-folded path, f32 (exact check)
    run_case(k1, B=2, C_in=4, C_out=8, K=3, T=16, dilation=1)

    # 2) wider channels + dilation -> per-tap path with halo, padded C_out
    run_case(k2, B=2, C_in=160, C_out=80, K=5, T=40, dilation=2,
             atol=1e-4, rtol=1e-4)

    # 3) bf16 MXU inputs with f32 accumulation (looser tolerance)
    run_case(k3, B=2, C_in=4, C_out=8, K=3, T=16, dilation=1,
             compute_dtype=jnp.bfloat16, atol=5e-2, rtol=5e-2)

    print("KERNEL_OK")
</pallas_src>

<mosaic_0001>
module attributes {stable_mosaic.version = 11 : i64} {
  func.func @_folded_kernel(%arg0: i32, %arg1: i32, %arg2: memref<1x16x12xf32, #tpu.memory_space<vmem>>, %arg3: memref<12x128xf32, #tpu.memory_space<vmem>>, %arg4: memref<1x128xf32, #tpu.memory_space<vmem>>, %arg5: memref<1x16x128xf32, #tpu.memory_space<vmem>>) attributes {dimension_semantics = [#tpu.dimension_semantics<parallel>, #tpu.dimension_semantics<parallel>], iteration_bounds = array<i64: 2, 1>, scalar_prefetch = 0 : i64, scratch_operands = 0 : i64, tpu.core_type = #tpu.core_type<tc>, window_params = [{transform_indices = @transform_0, window_bounds = array<i64: 1, 16, 12>}, {pipeline_mode = #tpu.pipeline_mode<synchronous>, transform_indices = @transform_1, window_bounds = array<i64: 12, 128>}, {pipeline_mode = #tpu.pipeline_mode<synchronous>, transform_indices = @transform_2, window_bounds = array<i64: 1, 128>}, {transform_indices = @transform_3, window_bounds = array<i64: 1, 16, 128>}]} {
    %c0 = arith.constant 0 : index
    %c0_0 = arith.constant 0 : index
    %c0_1 = arith.constant 0 : index
    %0 = vector.load %arg2[%c0, %c0_0, %c0_1] : memref<1x16x12xf32, #tpu.memory_space<vmem>>, vector<1x16x12xf32>
    %1 = vector.shape_cast %0 : vector<1x16x12xf32> to vector<16x12xf32>
    %c0_2 = arith.constant 0 : index
    %c0_3 = arith.constant 0 : index
    %2 = vector.load %arg3[%c0_2, %c0_3] : memref<12x128xf32, #tpu.memory_space<vmem>>, vector<12x128xf32>
    %cst = arith.constant dense<0.000000e+00> : vector<16x128xf32>
    %3 = tpu.matmul %1, %2, %cst {dimension_numbers = #tpu.dot_dimension_numbers<[1], [0], [0], [1], [0, 0, 1, 1], [], []>} : vector<16x12xf32>, vector<12x128xf32>, vector<16x128xf32> -> vector<16x128xf32>
    %c0_4 = arith.constant 0 : index
    %c0_5 = arith.constant 0 : index
    %4 = vector.load %arg4[%c0_4, %c0_5] : memref<1x128xf32, #tpu.memory_space<vmem>>, vector<1x128xf32>
    %5 = vector.broadcast %4 : vector<1x128xf32> to vector<16x128xf32>
    %6 = arith.addf %3, %5 : vector<16x128xf32>
    %c0_6 = arith.constant 0 : index
    %c0_7 = arith.constant 0 : index
    %c0_8 = arith.constant 0 : index
    %7 = vector.load %arg5[%c0_6, %c0_7, %c0_8] : memref<1x16x128xf32, #tpu.memory_space<vmem>>, vector<1x16x128xf32>
    %8 = vector.shape_cast %7 : vector<1x16x128xf32> to vector<16x128xf32>
    %9 = vector.shape_cast %6 : vector<16x128xf32> to vector<1x16x128xf32>
    tpu.vector_store %arg5[%c0_6, %c0_7, %c0_8], %9 {strides = array<i32>} : memref<1x16x128xf32, #tpu.memory_space<vmem>>, vector<1x16x128xf32>,
    return
  }
  func.func @transform_0(%arg0: i32, %arg1: i32) -> (i32, i32, i32) {
    %c0_i32 = arith.constant 0 : i32
    %c0_i32_0 = arith.constant 0 : i32
    return %arg0, %arg1, %c0_i32 : i32, i32, i32
  }
  func.func @transform_1(%arg0: i32, %arg1: i32) -> (i32, i32) {
    %c0_i32 = arith.constant 0 : i32
    %c0_i32_0 = arith.constant 0 : i32
    %c0_i32_1 = arith.constant 0 : i32
    return %c0_i32, %c0_i32_0 : i32, i32
  }
  func.func @transform_2(%arg0: i32, %arg1: i32) -> (i32, i32) {
    %c0_i32 = arith.constant 0 : i32
    %c0_i32_0 = arith.constant 0 : i32
    %c0_i32_1 = arith.constant 0 : i32
    return %c0_i32, %c0_i32_0 : i32, i32
  }
  func.func @transform_3(%arg0: i32, %arg1: i32) -> (i32, i32, i32) {
    %c0_i32 = arith.constant 0 : i32
    %c0_i32_0 = arith.constant 0 : i32
    return %arg0, %arg1, %c0_i32 : i32, i32, i32
  }
}

</mosaic_0001>

<bundles_post_ra>
// kernel: tpu_custom_call.1
= control target key start
LH: loop header
LB: loop body
LE: loop exit
PB: predicated region body
PF: predicated region fallthrough
CT: control target
= control target key end

     0   :  { %8 = vsyncpa [#allocation3], 0  ;;  %s716_s0 = inlined_call_operand.vmem [shape: f32[2,16,12], index: 0, kind: input, shape index: {}]   ;;  %s717_s1 = inlined_call_operand.vmem [shape: f32[12,128], index: 1, kind: input, shape index: {}]   ;;  %s718_s2 = inlined_call_operand.vmem [shape: f32[1,128], index: 2, kind: input, shape index: {}]   ;;  %s719_s3 = inlined_call_operand.hbm [shape: f32[2,16,128], index: 3, kind: output, shape index: {}]  }
   0x1   :  { %10 = vsyncpa [#allocation3 + $0x1], 0  ;;  %s592_s12 = smov 0   ;;  %s594_s13 = smov 0  }
   0x2   :  { %s596_s14 = smov 0   ;;  %s598_s15 = smov 0  }
   0x3   :  { %s600_s16 = smov 0   ;;  %s602_s17 = smov 0  }
   0x4 LB: > { %s394_s18 = sadd.s32 4294967295, %s566_s17   ;;  %s395_s19 = sadd.s32 4294967294, %s566_s17   ;;  %s566_s17 = sphi %s602_s17, %s16_s17   ;;  %s562_s16 = sphi %s600_s16, %s726_s16   ;;  %s558_s15 = sphi %s598_s15, %s725_s15   ;;  %s554_s14 = sphi %s596_s14, %s724_s14   ;;  %s550_s13 = sphi %s594_s13, %s723_s13   ;;  %s546_s12 = sphi %s592_s12, %s722_s12  }
   0x5   : > { %s28_s20 = sadd.s32 1, %s562_s16  ;;  %s107_s21 = sadd.s32 1, %s554_s14 }
   0x6   : > { %p30_p0 = scmp.ge.s32.totalorder %s28_s20, 2  ;;  %p117_p1 = scmp.ne.s32.totalorder %s554_s14, %s550_s13 }
   0x7   : > { %p118_p2 = scmp.eq.s32.totalorder %s394_s18, 1  ;;  %p123_p3 = scmp.ne.s32.totalorder %s550_s13, %s546_s12 }
   0x8   : > { %s728_s20 = smov (%p30_p0, %s28_s20), 0  ;;  %p124_p5 = scmp.eq.s32.totalorder %s395_s19, 1 }
   0x9   : > { %p632_p4 = por %p118_p2, %p117_p1  ;;  %s102_s23 = ssub.s32 %s562_s16, %s728_s20 }
   0xa   : > { %p398_p6 = scmp.ge.s32.totalorder %s566_s17, 1  ;;  %p105_p7 = scmp.eq.s32.totalorder %s102_s23, 0 }
   0xb   : > { %p639_p8 = por %p124_p5, %p123_p3  ;;  %p161_p9 = scmp.lt.s32.totalorder %s566_s17, 3 }
   0xc   : > { %s645_s25 = scalar_select %p105_p7, %s554_s14, %s107_s21  }
   0xd   : > { %p162_p10 = pnand %p398_p6, %p161_p9 }
   0xe   : > { %v202_v0 = vld [vmem:[%s717_s1] sm:$0xff] (!%p162_p10)  ;;  %v203_v1 = vld [vmem:[%s717_s1 + $0x8] sm:$0xf] (!%p162_p10)  ;;  %vm218_vm0 = vcmask (!%p162_p10), 1043456   ;;  %p190_p11 = scmp.lt.s32.totalorder (!%p162_p10), %s558_s15, 1  ;;  %vm568_vm1 = vmmov (!%p162_p10), 1  }
   0xf   : > { %165 = sbr.rel (%p162_p10) target bundleno = 258 (0x102), region = 32  ;;  %v424_v2 = vpack.c.bf16 (!%p162_p10), %v203_v1, %v202_v0  ;;  %vm425_vm2 = vmpackc.low (!%p162_p10), %vm218_vm0, %vm568_vm1  ;;  %vm211_vm3 = vcmask (!%p162_p10), 97280   ;;  %s186_s8 = sand.u32 (!%p162_p10), 1, %s550_s13   ;;  %v402_v5 = vld [vmem:[%s718_s2] ss:$0 sm:$0xff] (!%p162_p10) }
  0x10   : > { %s399_s9 = sshll.u32 (!%p162_p10), %s186_s8, 4  ;;  %s412_s21 = sshll.u32 (!%p162_p10), %s558_s15, 8 }
  0x11   : > { %426 = vmatprep.subr.msk.bf16.mxu0 (!%p162_p10), %vm425_vm2, %v424_v2  ;;  %s188_s18 = scalar_lea.vmem (!%p162_p10), [#allocation2], %s399_s9  ;;  %s668_s27 = scalar_lea.hbm (!%p162_p10), %s719_s3, %s412_s21 }
  0x12   : > { %429 = vmatpush3.bf16.msk.msra.mxu0 (!%p162_p10), %vm425_vm2, %v424_v2  ;;  %s315_s19 = sshll.u32 (!%p162_p10), %s188_s18, 4  ;;  %s670_s28 = scalar_lea.sflag (!%p162_p10), [#allocation3], %s186_s8  ;;  %s663_s19 = int_to_ptr.vmem [resolvable:$true] %s315_s19 }
  0x13   : > { %s488_s29 = scalar_lea.vmem (!%p162_p10), %s663_s19, 256 }
  0x14   : > { %p489_p12 = scmp.ne.s32.totalorder (!%p162_p10), %s663_s19, %s488_s29 }
  0x16   : > { %s191_s30 = scalar_select %p190_p11, %s558_s15, 1 }
  0x17   : > { %p490_p13 = pnand %p489_p12, %p632_p4  ;;  %s569_s15 = smov [#allocation2]  }
  0x18   : > { %s411_s4 = sshll.u32 %s191_s30, 4  ;;  %s492_s30 = sshll.u32 %s569_s15, 4  ;;  %s493_s30 = int_to_ptr.vmem [resolvable:$false] %s492_s30 }
  0x19   : > { %s197_s7 = scalar_lea.vmem %s716_s0, %s411_s4  ;;  %p491_p0 = pneg %p490_p13 }
  0x1a   : > { %v200_v3 = vld [vmem:[%s197_s7] sm:$0xff]  ;;  %v201_v4 = vld [vmem:[%s197_s7 + $0x8] sm:$0xff]  ;;  %s494_s4 = scalar_lea.vmem %s493_s30, 512  ;;  %p495_p1 = scmp.lt.s32.totalorder %s663_s19, %s493_s30 }
  0x1b   : > { %421 = vmatprep.mubr.msk.f32.mxu0 %vm211_vm3, %v200_v3  ;;  %p496_p2 = scmp.lt.s32.totalorder %s494_s4, %s488_s29 }
  0x1c   : > { %422 = vmatmul.mubr.msk.f32.vlgmr.msra.gmra.mrb[0].mxu0 %vm211_vm3, %v201_v4 }
  0x1d   : > { %p497_p3 = por %p496_p2, %p495_p1 }
  0x1f   : > { %p498_p5 = pnand %p497_p3, %p491_p0 }
  0xef   : > { %v423_v6 = vpop.f32.mrb[0].mxu0 }
  0xf0   : > { %v294_v7 = vadd.f32 %v423_v6, %v402_v5  ;;  %v288_v8 = vpop.f32.mrb[1].mxu0 }
  0xf1   : > { %v289_v9 = vadd.f32 %v402_v5, %v288_v8 }
  0xf2   : > { %298 = vst [vmem:[%s188_s18 + $0x8] sm:$0xff] %v294_v7 }
  0xf3   : > { %297 = vst [vmem:[%s188_s18] sm:$0xff] %v289_v9 }
  0xf4   : > { %501 = shalt.err (!%p498_p5)
}
  0xf5   : > { %s502_s5 = scalar_lea.hbm %s668_s27, 256  ;;  %s506_s8 = scalar_lea.hbm %s719_s3, 512 }
  0xf6   : > { %p503_p6 = scmp.ne.s32.totalorder %s668_s27, %s502_s5  ;;  %p507_p10 = scmp.lt.u32.totalorder %s668_s27, %s719_s3 }
  0xf7   : > { %p508_p11 = scmp.lt.u32.totalorder %s506_s8, %s502_s5  ;;  %p510_p13 = scmp.lt.u32.totalorder %s502_s5, %s668_s27 }
  0xf8   : > { %p504_p7 = pnand %p503_p6, %p632_p4 }
  0xf9   : > { %p509_p12 = por %p508_p11, %p507_p10 }
  0xfa   : > { %p505_p9 = pneg %p504_p7 }
  0xfb   : > { %p511_p0 = por %p510_p13, %p509_p12 }
  0xfd   : > { %p512_p1 = pnand %p511_p0, %p505_p9 }
  0xff   : > { %515 = shalt.err (!%p512_p1)
}
 0x100   : > { %s570_s11 = smov 128   ;;  %s571_s18 = smov 8  }
 0x101   : > { %430 = dma.vmem_to_hbm [thread:$0]  (%p632_p4), %s663_s19, 256, %s668_s27, %s670_s28, %s570_s11, %s570_s11, %s571_s18  }
 0x102 PF: > { %p436_p2 = scmp.ge.s32.totalorder %s566_s17, 2  ;;  %s330_s21 = sand.u32 1, %s546_s12  }
 0x103   : > { %s331_s23 = scalar_lea.sflag [#allocation3], %s330_s21 }
 0x104   : > { %p433_p3 = pnand %p436_p2, %p639_p8 }
 0x106   : > { %541 = dma.done.wait (!%p433_p3), %s331_s23, 256  }
 0x107   : > { %543 = vsyncadd (!%p433_p3), %s331_s23, 4294967040  ;;  %s16_s17 = sadd.s32 1, %s566_s17   ;;  %s722_s12 = smov %s550_s13 }
 0x108   : > { %p13_p5 = scmp.ge.s32.totalorder %s16_s17, 4   ;;  %s723_s13 = smov %s554_s14 }
 0x109   : > { %s724_s14 = smov %s645_s25  ;;  %s725_s15 = smov %s562_s16 }
 0x10a   : > { %s726_s16 = smov %s728_s20  ;;  %15 = sbr.rel (!%p13_p5) target bundleno = 4 (0x4), region = 67 }
 0x111   :  { %336 = vsyncpa [#allocation3], 1 }
 0x112   :  { %338 = vsyncpa [#allocation3 + $0x1], 1 }

</bundles_post_ra>
